<compile_context>
chip_gen: v5e
topology: v5e:2x2
jax: 0.10.0
libtpu: 0.0.40
codegen_flags: <defaults>
</compile_context>

<pallas_src>
import jax
import jax.numpy as jnp
from jax.experimental import pallas as pl
from jax.experimental.pallas import tpu as pltpu


# ----------------------------- kernels --------------------------------------


def _policy_head_resident_kernel(x_ref, w1_ref, b1_ref, w2_ref, b2_ref, out_ref):
    # One grid step per batch tile; weights fully resident in VMEM.
    # x: [tm, H_p] bf16; w1: [H_p, H_p] bf16; b1: [1, H_p] f32;
    # w2: [H_p, A_p] bf16; b2: [1, A_p] f32; out: [tm, A_p] f32.
    h = jnp.dot(x_ref[...], w1_ref[...], preferred_element_type=jnp.float32)
    h = jnp.maximum(h + b1_ref[...], 0.0)          # bias + ReLU in f32 (v5e-safe)
    out_ref[...] = (jnp.dot(h.astype(w2_ref.dtype), w2_ref[...],
                            preferred_element_type=jnp.float32)
                    + b2_ref[...]).astype(out_ref.dtype)


def _policy_head_streamed_kernel(x_ref, w1_ref, b1_ref, w2_ref, b2_ref, out_ref):
    # Grid: (i over batch tiles, k over hidden tiles).  Per step:
    #   h_k  = relu(x[i] @ w1_tile_k + b1[k])
    #   out += h_k @ w2[k, :]
    # Accumulates directly into the resident f32 out block (no scratch).
    # x: [tm, H_p] bf16 (resident per i); w1: [H_p, tk] bf16 (contiguous tile);
    # b1: [1, tk] f32; w2: [tk, A_p] bf16; b2: [1, A_p] f32; out: [tm, A_p] f32.
    k = pl.program_id(1)

    @pl.when(k == 0)
    def _():
        out_ref[...] = jnp.broadcast_to(b2_ref[...], out_ref.shape)

    h = jnp.dot(x_ref[...], w1_ref[...], preferred_element_type=jnp.float32)
    h = jnp.maximum(h + b1_ref[...], 0.0)
    out_ref[...] += jnp.dot(h.astype(w2_ref.dtype), w2_ref[...],
                            preferred_element_type=jnp.float32)


# --------------------------- helpers / prepare -------------------------------


def _round_up(x, m):
    return ((x + m - 1) // m) * m


def _pick_tk(h_p):
    # h_p is a multiple of 256; prefer full-MXU-width tiles (512/256 only).
    if h_p % 512 == 0 and h_p > 512:
        return 512
    return min(h_p, 256) if h_p < 256 else 256 if h_p % 512 else 512


def _vmem_capacity_bytes():
    try:
        cap = getattr(pltpu.get_tpu_info(), "vmem_capacity_bytes", None)
        if cap:
            return int(cap)
    except Exception:
        pass
    return 64 << 20  # conservative fallback (v7x physical per-TC VMEM)


def prepare_policy_params(params, action_type="discrete", force_streamed=False):
    """One-time preprocessing (at init / param-update time, NOT per forward):
    pad weights to lane-dense shapes, cast matmul operands to bf16, pick the
    tiling/layout.  Returns a dict consumed by policy_head_forward."""
    H = params["w1"].shape[0]
    A = params["w2"].shape[1]
    H_p = _round_up(H, 256)          # 256-wide MXU on v6e/v7x; harmless on v5e
    A_p = _round_up(A, 128)          # lane-dense output stores

    vmem_cap = _vmem_capacity_bytes()
    vmem_budget = (vmem_cap * 7) // 8   # ~56 MiB on v7x, ~112 MiB on v5e/v6e

    w1 = jnp.pad(params["w1"].astype(jnp.float32), ((0, H_p - H), (0, H_p - H)))
    w2 = jnp.pad(params["w2"].astype(jnp.float32), ((0, H_p - H), (0, A_p - A)))
    b1 = jnp.pad(jnp.reshape(params["b1"], (1, -1)).astype(jnp.float32),
                 ((0, 0), (0, H_p - H)))
    b2 = jnp.pad(jnp.reshape(params["b2"], (1, -1)).astype(jnp.float32),
                 ((0, 0), (0, A_p - A)))

    weight_bytes = H_p * H_p * 2 + H_p * A_p * 2
    # worst-case per-call activation footprint (tm <= 256, double-buffered)
    act_bytes = 2 * 256 * H_p * 2 + 2 * 256 * A_p * 4 + 2 * (H_p + A_p) * 4
    resident = (2 * weight_bytes + act_bytes + (4 << 20) <= vmem_budget
                ) and not force_streamed

    if resident:
        w1_out = w1.astype(jnp.bfloat16)                       # [H_p, H_p]
        tk, nk = H_p, 1
    else:
        tk = _pick_tk(H_p)
        nk = H_p // tk
        # Re-layout so each (H_p, tk) column tile is contiguous in HBM.
        w1_out = jnp.transpose(w1.reshape(H_p, nk, tk),
                               (1, 0, 2)).astype(jnp.bfloat16)  # [nk, H_p, tk]

    prepared = dict(w1=w1_out, b1=b1, w2=w2.astype(jnp.bfloat16), b2=b2,
                    H=H, A=A, H_p=H_p, A_p=A_p, tk=tk, nk=nk,
                    resident=resident, vmem_budget=int(vmem_budget))
    if action_type == "continuous":
        prepared["log_std"] = jnp.asarray(params["log_std"], jnp.float32)
    return prepared


def _vmem_limit_bytes(prepared, tm):
    H_p, A_p, tk = prepared["H_p"], prepared["A_p"], prepared["tk"]
    if prepared["resident"]:
        need = (2 * (H_p * H_p * 2 + H_p * A_p * 2 + (H_p + A_p) * 4)
                + 2 * tm * H_p * 2 + 2 * tm * A_p * 4)
    else:
        need = (3 * (H_p * tk * 2 + tk * A_p * 2)     # Buffered(3) weight tiles
                + 2 * (tk + A_p) * 4
                + 2 * tm * H_p * 2 + 2 * tm * A_p * 4)
    need += 4 << 20                                    # slack
    return int(min(max(need, 16 << 20), prepared["vmem_budget"]))


# ------------------------------ forward --------------------------------------


def policy_head_forward(features, prepared, action_type="discrete"):
    """features: [B, hidden_dim] float32.  prepared: dict from prepare_policy_params."""
    # TODO(synk): at toy shapes (B~2, H~32) this op is pure launch latency;
    # fuse into the caller's kernel or batch many envs before micro-tuning.
    B, H = features.shape
    assert H == prepared["H"], "feature dim mismatch with prepared params"
    H_p, A_p, A = prepared["H_p"], prepared["A_p"], prepared["A"]
    tk, nk = prepared["tk"], prepared["nk"]

    tm = min(256, _round_up(B, 16))                    # bf16 sublane packing
    if B >= 32 and _round_up(B, tm) // tm < 2:
        tm = max(16, _round_up((B + 1) // 2, 16))      # v7x: feed both TCs
    B_p = _round_up(B, tm)
    nb = B_p // tm

    # Only the activations are padded/cast per call; weights were prepared once.
    x = jnp.pad(features.astype(jnp.float32),
                ((0, B_p - B), (0, H_p - H))).astype(jnp.bfloat16)

    w1, b1, w2, b2 = prepared["w1"], prepared["b1"], prepared["w2"], prepared["b2"]
    vmem_limit = _vmem_limit_bytes(prepared, tm)
    flops = 2 * B_p * H_p * H_p + 2 * B_p * H_p * A_p

    if prepared["resident"]:
        cost = pl.CostEstimate(
            flops=flops, transcendentals=0,
            bytes_accessed=(B_p * H_p * 2 + H_p * H_p * 2 + H_p * A_p * 2
                            + (H_p + A_p) * 4 + B_p * A_p * 4))
        logits_p = pl.pallas_call(
            _policy_head_resident_kernel,
            out_shape=jax.ShapeDtypeStruct((B_p, A_p), jnp.float32),
            grid_spec=pltpu.PrefetchScalarGridSpec(
                num_scalar_prefetch=0,
                grid=(nb,),
                in_specs=[
                    pl.BlockSpec((tm, H_p), lambda i: (i, 0)),    # x tile
                    pl.BlockSpec((H_p, H_p), lambda i: (0, 0)),   # w1 resident
                    pl.BlockSpec((1, H_p), lambda i: (0, 0)),     # b1 resident
                    pl.BlockSpec((H_p, A_p), lambda i: (0, 0)),   # w2 resident
                    pl.BlockSpec((1, A_p), lambda i: (0, 0)),     # b2 resident
                ],
                out_specs=pl.BlockSpec((tm, A_p), lambda i: (i, 0)),
            ),
            compiler_params=pltpu.CompilerParams(
                dimension_semantics=("parallel",),
                vmem_limit_bytes=vmem_limit),
            cost_estimate=cost,
        )(x, w1, b1, w2, b2)
    else:
        cost = pl.CostEstimate(
            flops=flops, transcendentals=0,
            bytes_accessed=(B_p * H_p * 2
                            + nb * (H_p * H_p * 2 + H_p * A_p * 2)  # re-streamed
                            + nb * (H_p + A_p) * 4 + B_p * A_p * 4))
        logits_p = pl.pallas_call(
            _policy_head_streamed_kernel,
            out_shape=jax.ShapeDtypeStruct((B_p, A_p), jnp.float32),
            grid_spec=pltpu.PrefetchScalarGridSpec(
                num_scalar_prefetch=0,
                grid=(nb, nk),
                in_specs=[
                    pl.BlockSpec((tm, H_p), lambda i, k: (i, 0)),        # x (per-i resident)
                    pl.BlockSpec((None, H_p, tk), lambda i, k: (k, 0, 0),  # contiguous w1 tile
                                 pipeline_mode=pl.Buffered(3)),
                    pl.BlockSpec((1, tk), lambda i, k: (0, k)),          # b1 tile
                    pl.BlockSpec((tk, A_p), lambda i, k: (k, 0),         # w2 row tile
                                 pipeline_mode=pl.Buffered(3)),
                    pl.BlockSpec((1, A_p), lambda i, k: (0, 0)),         # b2
                ],
                out_specs=pl.BlockSpec((tm, A_p), lambda i, k: (i, 0)),
            ),
            compiler_params=pltpu.CompilerParams(
                dimension_semantics=("parallel", "arbitrary"),
                vmem_limit_bytes=vmem_limit),
            cost_estimate=cost,
        )(x, w1, b1, w2, b2)

    logits = logits_p[:B, :A]
    if action_type == "discrete":
        return logits
    # continuous: std = exp(log_std) broadcast (glue, not hot path)
    std = jnp.broadcast_to(jnp.exp(prepared["log_std"]), logits.shape)
    return logits, std


# ------------------------------ init / test ----------------------------------


def init_params(key, hidden_dim, action_dim, action_type="discrete"):
    """Deterministic init mirroring nn.Linear default (uniform +-1/sqrt(fan_in)).
    Weights stored as [in, out] (transpose of PyTorch's [out, in])."""
    k1, k2, k3, k4 = jax.random.split(key, 4)
    bound = 1.0 / jnp.sqrt(hidden_dim)
    params = {
        "w1": jax.random.uniform(k1, (hidden_dim, hidden_dim), jnp.float32, -bound, bound),
        "b1": jax.random.uniform(k2, (hidden_dim,), jnp.float32, -bound, bound),
        "w2": jax.random.uniform(k3, (hidden_dim, action_dim), jnp.float32, -bound, bound),
        "b2": jax.random.uniform(k4, (action_dim,), jnp.float32, -bound, bound),
    }
    if action_type == "continuous":
        params["log_std"] = jnp.zeros((action_dim,), jnp.float32)
    return params


if __name__ == "__main__":
    key = jax.random.PRNGKey(0)
    batch, hidden_dim, action_dim = 2, 32, 8
    kx, kp, kextra = jax.random.split(key, 3)
    features = jax.random.normal(kx, (batch, hidden_dim), jnp.float32)

    # --- discrete head (resident-weight path) ---
    params_d = init_params(kp, hidden_dim, action_dim, "discrete")
    prep_d = prepare_policy_params(params_d, "discrete")
    logits = policy_head_forward(features, prep_d, "discrete")
    jax.block_until_ready(logits)

    ref_h = jnp.maximum(features @ params_d["w1"] + params_d["b1"][None, :], 0.0)
    ref_logits = ref_h @ params_d["w2"] + params_d["b2"][None, :]
    assert logits.shape == (batch, action_dim)
    # tolerance loosened: x/w1/w2 and intermediate h intentionally bf16 on MXU
    assert jnp.allclose(logits, ref_logits, atol=5e-2, rtol=5e-2), (
        float(jnp.max(jnp.abs(logits - ref_logits))))

    # --- continuous head ---
    params_c = init_params(kp, hidden_dim, action_dim, "continuous")
    prep_c = prepare_policy_params(params_c, "continuous")
    logits_c, std_c = policy_head_forward(features, prep_c, "continuous")
    jax.block_until_ready((logits_c, std_c))
    assert logits_c.shape == (batch, action_dim)
    assert std_c.shape == (batch, action_dim)
    assert jnp.allclose(std_c, jnp.ones_like(std_c))

    # --- streamed (k-tiled) fallback path, forced for coverage ---
    b2n, h2, a2 = 4, 768, 8
    kx2, kp2 = jax.random.split(kextra)
    feats2 = jax.random.normal(kx2, (b2n, h2), jnp.float32)
    params2 = init_params(kp2, h2, a2, "discrete")
    prep2 = prepare_policy_params(params2, "discrete", force_streamed=True)
    assert (not prep2["resident"]) and prep2["nk"] > 1
    out2 = policy_head_forward(feats2, prep2, "discrete")
    jax.block_until_ready(out2)
    ref2 = (jnp.maximum(feats2 @ params2["w1"] + params2["b1"][None, :], 0.0)
            @ params2["w2"] + params2["b2"][None, :])
    assert out2.shape == (b2n, a2)
    assert jnp.allclose(out2, ref2, atol=1e-1, rtol=5e-2), (
        float(jnp.max(jnp.abs(out2 - ref2))))

    print("KERNEL_OK")
</pallas_src>

<mosaic_0001>
module attributes {stable_mosaic.version = 11 : i64} {
  func.func @_policy_head_resident_kernel(%arg0: i32, %arg1: memref<16x256xbf16, #tpu.memory_space<vmem>>, %arg2: memref<256x256xbf16, #tpu.memory_space<vmem>>, %arg3: memref<1x256xf32, #tpu.memory_space<vmem>>, %arg4: memref<256x128xbf16, #tpu.memory_space<vmem>>, %arg5: memref<1x128xf32, #tpu.memory_space<vmem>>, %arg6: memref<16x128xf32, #tpu.memory_space<vmem>>) attributes {dimension_semantics = [#tpu.dimension_semantics<parallel>], iteration_bounds = array<i64: 1>, scalar_prefetch = 0 : i64, scratch_operands = 0 : i64, tpu.core_type = #tpu.core_type<tc>, window_params = [{transform_indices = @transform_0, window_bounds = array<i64: 16, 256>}, {pipeline_mode = #tpu.pipeline_mode<synchronous>, transform_indices = @transform_1, window_bounds = array<i64: 256, 256>}, {pipeline_mode = #tpu.pipeline_mode<synchronous>, transform_indices = @transform_2, window_bounds = array<i64: 1, 256>}, {pipeline_mode = #tpu.pipeline_mode<synchronous>, transform_indices = @transform_3, window_bounds = array<i64: 256, 128>}, {pipeline_mode = #tpu.pipeline_mode<synchronous>, transform_indices = @transform_4, window_bounds = array<i64: 1, 128>}, {transform_indices = @transform_5, window_bounds = array<i64: 16, 128>}]} {
    %c0 = arith.constant 0 : index
    %c0_0 = arith.constant 0 : index
    %0 = vector.load %arg1[%c0, %c0_0] : memref<16x256xbf16, #tpu.memory_space<vmem>>, vector<16x256xbf16>
    %c0_1 = arith.constant 0 : index
    %c0_2 = arith.constant 0 : index
    %1 = vector.load %arg2[%c0_1, %c0_2] : memref<256x256xbf16, #tpu.memory_space<vmem>>, vector<256x256xbf16>
    %cst = arith.constant dense<0.000000e+00> : vector<16x256xf32>
    %2 = tpu.matmul %0, %1, %cst {dimension_numbers = #tpu.dot_dimension_numbers<[1], [0], [0], [1], [0, 0, 1, 1], [], []>} : vector<16x256xbf16>, vector<256x256xbf16>, vector<16x256xf32> -> vector<16x256xf32>
    %c0_3 = arith.constant 0 : index
    %c0_4 = arith.constant 0 : index
    %3 = vector.load %arg3[%c0_3, %c0_4] : memref<1x256xf32, #tpu.memory_space<vmem>>, vector<1x256xf32>
    %4 = vector.broadcast %3 : vector<1x256xf32> to vector<16x256xf32>
    %5 = arith.addf %2, %4 : vector<16x256xf32>
    %cst_5 = arith.constant 0.000000e+00 : f32
    %6 = vector.broadcast %cst_5 : f32 to vector<16x256xf32>
    %7 = arith.maximumf %5, %6 : vector<16x256xf32>
    %8 = arith.truncf %7 : vector<16x256xf32> to vector<16x256xbf16>
    %c0_6 = arith.constant 0 : index
    %c0_7 = arith.constant 0 : index
    %9 = vector.load %arg4[%c0_6, %c0_7] : memref<256x128xbf16, #tpu.memory_space<vmem>>, vector<256x128xbf16>
    %cst_8 = arith.constant dense<0.000000e+00> : vector<16x128xf32>
    %10 = tpu.matmul %8, %9, %cst_8 {dimension_numbers = #tpu.dot_dimension_numbers<[1], [0], [0], [1], [0, 0, 1, 1], [], []>} : vector<16x256xbf16>, vector<256x128xbf16>, vector<16x128xf32> -> vector<16x128xf32>
    %c0_9 = arith.constant 0 : index
    %c0_10 = arith.constant 0 : index
    %11 = vector.load %arg5[%c0_9, %c0_10] : memref<1x128xf32, #tpu.memory_space<vmem>>, vector<1x128xf32>
    %12 = vector.broadcast %11 : vector<1x128xf32> to vector<16x128xf32>
    %13 = arith.addf %10, %12 : vector<16x128xf32>
    %c0_11 = arith.constant 0 : index
    %c0_12 = arith.constant 0 : index
    %14 = vector.load %arg6[%c0_11, %c0_12] : memref<16x128xf32, #tpu.memory_space<vmem>>, vector<16x128xf32>
    tpu.vector_store %arg6[%c0_11, %c0_12], %13 {strides = array<i32>} : memref<16x128xf32, #tpu.memory_space<vmem>>, vector<16x128xf32>,
    return
  }
  func.func @transform_0(%arg0: i32) -> (i32, i32) {
    %c0_i32 = arith.constant 0 : i32
    %c0_i32_0 = arith.constant 0 : i32
    return %arg0, %c0_i32 : i32, i32
  }
  func.func @transform_1(%arg0: i32) -> (i32, i32) {
    %c0_i32 = arith.constant 0 : i32
    %c0_i32_0 = arith.constant 0 : i32
    %c0_i32_1 = arith.constant 0 : i32
    return %c0_i32, %c0_i32_0 : i32, i32
  }
  func.func @transform_2(%arg0: i32) -> (i32, i32) {
    %c0_i32 = arith.constant 0 : i32
    %c0_i32_0 = arith.constant 0 : i32
    %c0_i32_1 = arith.constant 0 : i32
    return %c0_i32, %c0_i32_0 : i32, i32
  }
  func.func @transform_3(%arg0: i32) -> (i32, i32) {
    %c0_i32 = arith.constant 0 : i32
    %c0_i32_0 = arith.constant 0 : i32
    %c0_i32_1 = arith.constant 0 : i32
    return %c0_i32, %c0_i32_0 : i32, i32
  }
  func.func @transform_4(%arg0: i32) -> (i32, i32) {
    %c0_i32 = arith.constant 0 : i32
    %c0_i32_0 = arith.constant 0 : i32
    %c0_i32_1 = arith.constant 0 : i32
    return %c0_i32, %c0_i32_0 : i32, i32
  }
  func.func @transform_5(%arg0: i32) -> (i32, i32) {
    %c0_i32 = arith.constant 0 : i32
    %c0_i32_0 = arith.constant 0 : i32
    return %arg0, %c0_i32 : i32, i32
  }
}

</mosaic_0001>

<bundles_post_ra>
// kernel: tpu_custom_call.1
= control target key start
LH: loop header
LB: loop body
LE: loop exit
PB: predicated region body
PF: predicated region fallthrough
CT: control target
= control target key end

     0   :  { %10 = vsyncpa [#allocation3], 0  ;;  %s991_s0 = inlined_call_operand.hbm [shape: bf16[16,256], index: 0, kind: input, shape index: {}]   ;;  %s992_s1 = inlined_call_operand.hbm [shape: bf16[256,256], index: 1, kind: input, shape index: {}]   ;;  %s993_s2 = inlined_call_operand.hbm [shape: f32[1,256], index: 2, kind: input, shape index: {}]   ;;  %s994_s3 = inlined_call_operand.hbm [shape: bf16[256,128], index: 3, kind: input, shape index: {}]   ;;  %s995_s4 = inlined_call_operand.vmem [shape: f32[1,128], index: 4, kind: input, shape index: {}]   ;;  %s996_s5 = inlined_call_operand.hbm [shape: f32[16,128], index: 5, kind: output, shape index: {}]  }
   0x1   :  { %11 = vsyncpa [#allocation6], 0 }
   0x2   :  { %12 = vsyncpa [#allocation9], 0 }
   0x3   :  { %13 = vsyncpa [#allocation4], 0  ;;  %s31_s20 = sshll.u32 %s992_s1, 4  ;;  %s925_s21 = smov [#allocation5]   ;;  %s32_s20 = int_to_ptr.hbm [resolvable:$true] %s31_s20 }
   0x4   :  { %s33_s22 = sshll.u32 %s925_s21, 4  ;;  %s18_s25 = sshll.u32 %s991_s0, 4  ;;  %s34_s22 = int_to_ptr.vmem [resolvable:$true] %s33_s22  ;;  %s19_s25 = int_to_ptr.hbm [resolvable:$true] %s18_s25 }
   0x5   :  { %s926_s26 = smov 128   ;;  %s927_s27 = smov 8  }
   0x6   :  { %39 = dma.hbm_to_vmem [thread:$0]  %s32_s20, 4096, %s34_s22, [#allocation6], %s926_s26, %s926_s26, %s927_s27  }
   0x7   :  { %s928_s28 = smov [#allocation2]   ;;  %s45_s1 = sshll.u32 %s993_s2, 4  ;;  %s46_s1 = int_to_ptr.hbm [resolvable:$true] %s45_s1 }
   0x8   :  { %s20_s29 = sshll.u32 %s928_s28, 4  ;;  %s55_s8 = sshll.u32 %s994_s3, 4  ;;  %s21_s29 = int_to_ptr.vmem [resolvable:$true] %s20_s29  ;;  %s56_s8 = int_to_ptr.hbm [resolvable:$true] %s55_s8 }
   0x9   :  { %26 = dma.hbm_to_vmem [thread:$0]  %s19_s25, 256, %s21_s29, [#allocation3], %s926_s26, %s926_s26, %s927_s27  }
   0xa   :  { %s929_s9 = smov [#allocation7]   ;;  %s930_s11 = smov [#allocation8]  }
   0xb   :  { %s47_s10 = sshll.u32 %s929_s9, 4  ;;  %s57_s12 = sshll.u32 %s930_s11, 4  ;;  %s48_s10 = int_to_ptr.vmem [resolvable:$true] %s47_s10  ;;  %s58_s12 = int_to_ptr.vmem [resolvable:$true] %s57_s12 }
   0xc   :  { %50 = dma.hbm_to_vmem [thread:$0]  %s46_s1, 32, %s48_s10, [#allocation6]  }
   0xd   :  { %s931_s13 = smov 64   ;;  %s932_s2 = smov 4  }
   0xe   :  { %63 = dma.hbm_to_vmem [thread:$0]  %s56_s8, 2048, %s58_s12, [#allocation9], %s931_s13, %s931_s13, %s932_s2  }
   0xf   :  { %917 = dma.done.wait [#allocation3], 256  }
  0x10   :  { %918 = vsyncadd [#allocation3], 4294967040 }
  0x11   :  { %919 = dma.done.wait [#allocation6], 4128  }
  0x12   :  { %920 = vsyncadd [#allocation6], 4294963168 }
  0x13   :  { %921 = dma.done.wait [#allocation9], 2048  }
  0x14   :  { %922 = vsyncadd [#allocation9], 4294965248  ;;  %v603_v0 = vld [vmem:[#allocation5 + $0x70] sm:$0xf]  ;;  %v754_v1 = vld [vmem:[#allocation5 + $0x74] sm:$0xf0] }
  0x15   :  { %v667_v2 = vld [vmem:[#allocation5 + $0xf0] sm:$0xf]  ;;  %v604_v3 = vor.u32 %v754_v1, %v603_v0  ;;  %v770_v4 = vld [vmem:[#allocation5 + $0xf4] sm:$0xf0]  ;;  %v753_v5 = vld [vmem:[#allocation5 + $0x74] sm:$0xf] }
  0x16   :  { %v605_v6 = vld [vmem:[#allocation5 + $0x78] sm:$0xf0]  ;;  %v668_v7 = vor.u32 %v770_v4, %v667_v2  ;;  %v769_v9 = vld [vmem:[#allocation5 + $0xf4] sm:$0xf]  ;;  %v595_v11 = vld [vmem:[#allocation5 + $0x60] sm:$0xf] }
  0x17   :  { %v608_v8 = vor.u32 %v753_v5, %v605_v6  ;;  %v669_v10 = vld [vmem:[#allocation5 + $0xf8] sm:$0xf0]  ;;  %292 = vmatpush.bf16.msra.mxu0 %v604_v3  ;;  %v752_v13 = vld [vmem:[#allocation5 + $0x64] sm:$0xf0]  ;;  %v659_v14 = vld [vmem:[#allocation5 + $0xe0] sm:$0xf] }
  0x18   :  { %v672_v12 = vor.u32 %v769_v9, %v669_v10  ;;  %v768_v15 = vld [vmem:[#allocation5 + $0xe4] sm:$0xf0]  ;;  %306 = vmatpush.bf16.msra.mxu1 %v668_v7  ;;  %v596_v16 = vor.u32 %v752_v13, %v595_v11  ;;  %v751_v18 = vld [vmem:[#allocation5 + $0x64] sm:$0xf]  ;;  %v597_v19 = vld [vmem:[#allocation5 + $0x68] sm:$0xf0] }
  0x19   :  { %320 = vmatpush.bf16.msra.mxu2 %v608_v8  ;;  %v660_v17 = vor.u32 %v768_v15, %v659_v14  ;;  %v767_v20 = vld [vmem:[#allocation5 + $0xe4] sm:$0xf]  ;;  %v600_v21 = vor.u32 %v751_v18, %v597_v19  ;;  %v661_v22 = vld [vmem:[#allocation5 + $0xe8] sm:$0xf0]  ;;  %v587_v23 = vld [vmem:[#allocation5 + $0x50] sm:$0xf] }
  0x1a   :  { %334 = vmatpush.bf16.msra.mxu3 %v672_v12  ;;  %v750_v24 = vld [vmem:[#allocation5 + $0x54] sm:$0xf0]  ;;  %v664_v25 = vor.u32 %v767_v20, %v661_v22  ;;  %v651_v26 = vld [vmem:[#allocation5 + $0xd0] sm:$0xf]  ;;  %v749_v28 = vld [vmem:[#allocation5 + $0x54] sm:$0xf] }
  0x1b   :  { %v766_v27 = vld [vmem:[#allocation5 + $0xd4] sm:$0xf0]  ;;  %293 = vmatpush.bf16.msra.mxu0 %v596_v16  ;;  %v588_v29 = vor.u32 %v750_v24, %v587_v23  ;;  %v589_v30 = vld [vmem:[#allocation5 + $0x58] sm:$0xf0]  ;;  %v765_v31 = vld [vmem:[#allocation5 + $0xd4] sm:$0xf] }
  0x1c   :  { %v653_v32 = vld [vmem:[#allocation5 + $0xd8] sm:$0xf0]  ;;  %307 = vmatpush.bf16.msra.mxu1 %v660_v17  ;;  %v652_v33 = vor.u32 %v766_v27, %v651_v26  ;;  %v592_v34 = vor.u32 %v749_v28, %v589_v30  ;;  %v579_v35 = vld [vmem:[#allocation5 + $0x40] sm:$0xf]  ;;  %v748_v36 = vld [vmem:[#allocation5 + $0x44] sm:$0xf0] }
  0x1d   :  { %321 = vmatpush.bf16.msra.mxu2 %v600_v21  ;;  %v643_v37 = vld [vmem:[#allocation5 + $0xc0] sm:$0xf]  ;;  %v656_v38 = vor.u32 %v765_v31, %v653_v32  ;;  %v764_v39 = vld [vmem:[#allocation5 + $0xc4] sm:$0xf0]  ;;  %v747_v40 = vld [vmem:[#allocation5 + $0x44] sm:$0xf]  ;;  %v580_v44 = vor.u32 %v748_v36, %v579_v35 }
  0x1e   :  { %335 = vmatpush.bf16.msra.mxu3 %v664_v25  ;;  %v581_v41 = vld [vmem:[#allocation5 + $0x48] sm:$0xf0]  ;;  %v763_v42 = vld [vmem:[#allocation5 + $0xc4] sm:$0xf]  ;;  %v644_v45 = vor.u32 %v764_v39, %v643_v37  ;;  %v571_v47 = vld [vmem:[#allocation5 + $0x30] sm:$0xf] }
  0x1f   :  { %v645_v43 = vld [vmem:[#allocation5 + $0xc8] sm:$0xf0]  ;;  %294 = vmatpush.bf16.msra.mxu0 %v588_v29  ;;  %v584_v46 = vor.u32 %v747_v40, %v581_v41  ;;  %v746_v48 = vld [vmem:[#allocation5 + $0x34] sm:$0xf0]  ;;  %v635_v49 = vld [vmem:[#allocation5 + $0xb0] sm:$0xf] }
  0x20   :  { %308 = vmatpush.bf16.msra.mxu1 %v652_v33  ;;  %v648_v50 = vor.u32 %v763_v42, %v645_v43  ;;  %v762_v51 = vld [vmem:[#allocation5 + $0xb4] sm:$0xf0]  ;;  %v745_v52 = vld [vmem:[#allocation5 + $0x34] sm:$0xf]  ;;  %v573_v53 = vld [vmem:[#allocation5 + $0x38] sm:$0xf0]  ;;  %v572_v56 = vor.u32 %v746_v48, %v571_v47 }
  0x21   :  { %322 = vmatpush.bf16.msra.mxu2 %v592_v34  ;;  %v761_v54 = vld [vmem:[#allocation5 + $0xb4] sm:$0xf]  ;;  %v637_v55 = vld [vmem:[#allocation5 + $0xb8] sm:$0xf0]  ;;  %v636_v57 = vor.u32 %v762_v51, %v635_v49  ;;  %v576_v58 = vor.u32 %v745_v52, %v573_v53  ;;  %v563_v59 = vld [vmem:[#allocation5 + $0x20] sm:$0xf] }
  0x22   :  { %336 = vmatpush.bf16.msra.mxu3 %v656_v38  ;;  %v744_v60 = vld [vmem:[#allocation5 + $0x24] sm:$0xf0]  ;;  %v627_v61 = vld [vmem:[#allocation5 + $0xa0] sm:$0xf]  ;;  %v640_v62 = vor.u32 %v761_v54, %v637_v55  ;;  %v743_v0 = vld [vmem:[#allocation5 + $0x24] sm:$0xf] }
  0x23   :  { %295 = vmatpush.bf16.msra.mxu0 %v580_v44  ;;  %v760_v63 = vld [vmem:[#allocation5 + $0xa4] sm:$0xf0]  ;;  %v565_v1 = vld [vmem:[#allocation5 + $0x28] sm:$0xf0]  ;;  %v759_v2 = vld [vmem:[#allocation5 + $0xa4] sm:$0xf]  ;;  %v564_v4 = vor.u32 %v744_v60, %v563_v59 }
  0x24   :  { %309 = vmatpush.bf16.msra.mxu1 %v644_v45  ;;  %v629_v3 = vld [vmem:[#allocation5 + $0xa8] sm:$0xf0]  ;;  %v628_v5 = vor.u32 %v760_v63, %v627_v61  ;;  %v568_v6 = vor.u32 %v743_v0, %v565_v1  ;;  %v555_v7 = vld [vmem:[#allocation5 + $0x10] sm:$0xf]  ;;  %v742_v8 = vld [vmem:[#allocation5 + $0x14] sm:$0xf0] }
  0x25   :  { %323 = vmatpush.bf16.msra.mxu2 %v584_v46  ;;  %v619_v9 = vld [vmem:[#allocation5 + $0x90] sm:$0xf]  ;;  %v632_v10 = vor.u32 %v759_v2, %v629_v3  ;;  %v758_v11 = vld [vmem:[#allocation5 + $0x94] sm:$0xf0]  ;;  %v741_v12 = vld [vmem:[#allocation5 + $0x14] sm:$0xf]  ;;  %v556_v16 = vor.u32 %v742_v8, %v555_v7 }
  0x26   :  { %337 = vmatpush.bf16.msra.mxu3 %v648_v50  ;;  %v557_v13 = vld [vmem:[#allocation5 + $0x18] sm:$0xf0]  ;;  %v757_v14 = vld [vmem:[#allocation5 + $0x94] sm:$0xf]  ;;  %v547_v17 = vld [vmem:[#allocation5] sm:$0xf]  ;;  %v620_v18 = vor.u32 %v758_v11, %v619_v9 }
  0x27   :  { %296 = vmatpush.bf16.msra.mxu0 %v572_v56  ;;  %v621_v15 = vld [vmem:[#allocation5 + $0x98] sm:$0xf0]  ;;  %v560_v19 = vor.u32 %v741_v12, %v557_v13  ;;  %v740_v20 = vld [vmem:[#allocation5 + $0x4] sm:$0xf0]  ;;  %v611_v21 = vld [vmem:[#allocation5 + $0x80] sm:$0xf] }
  0x28   :  { %310 = vmatpush.bf16.msra.mxu1 %v636_v57  ;;  %v756_v22 = vld [vmem:[#allocation5 + $0x84] sm:$0xf0]  ;;  %v624_v23 = vor.u32 %v757_v14, %v621_v15  ;;  %v739_v24 = vld [vmem:[#allocation5 + $0x4] sm:$0xf]  ;;  %v549_v25 = vld [vmem:[#allocation5 + $0x8] sm:$0xf0]  ;;  %v548_v28 = vor.u32 %v740_v20, %v547_v17 }
  0x29   :  { %324 = vmatpush.bf16.msra.mxu2 %v576_v58  ;;  %v755_v26 = vld [vmem:[#allocation5 + $0x84] sm:$0xf]  ;;  %v613_v27 = vld [vmem:[#allocation5 + $0x88] sm:$0xf0]  ;;  %v539_v29 = vld [vmem:[#allocation2] sm:$0xf]  ;;  %v612_v31 = vor.u32 %v756_v22, %v611_v21  ;;  %v552_v32 = vor.u32 %v739_v24, %v549_v25 }
  0x2a   :  { %338 = vmatpush.bf16.msra.mxu3 %v640_v62  ;;  %v738_v30 = vld [vmem:[#allocation2 + $0x4] sm:$0xf0]  ;;  %v737_v33 = vld [vmem:[#allocation2 + $0x4] sm:$0xf]  ;;  %v541_v34 = vld [vmem:[#allocation2 + $0x8] sm:$0xf0]  ;;  %v616_v35 = vor.u32 %v755_v26, %v613_v27 }
  0x2b   :  { %297 = vmatpush.bf16.msra.mxu0 %v564_v4  ;;  %v778_v36 = vld [vmem:[#allocation8 + $0x38] sm:$0xff]  ;;  %v540_v37 = vor.u32 %v738_v30, %v539_v29  ;;  %v544_v39 = vor.u32 %v737_v33, %v541_v34  ;;  %v777_v40 = vld [vmem:[#allocation8 + $0x30] sm:$0xff]  ;;  %v776_v42 = vld [vmem:[#allocation8 + $0x28] sm:$0xff]  ;;  %s933_s15 = smov [#allocation10]   ;;  %s522_s19 = sshll.u32 %s996_s5, 4  ;;  %s523_s19 = int_to_ptr.hbm [resolvable:$true] %s522_s19 }
  0x2c   :  { %311 = vmatpush.bf16.msra.mxu1 %v628_v5  ;;  %v786_v38 = vld [vmem:[#allocation8 + $0x78] sm:$0xff]  ;;  %v785_v41 = vld [vmem:[#allocation8 + $0x70] sm:$0xff]  ;;  %v775_v43 = vld [vmem:[#allocation8 + $0x20] sm:$0xff]  ;;  %s520_s16 = sshll.u32 %s933_s15, 4  ;;  %s521_s16 = int_to_ptr.vmem [resolvable:$true] %s520_s16 }
  0x2d   :  { %325 = vmatpush.bf16.msra.mxu2 %v568_v6  ;;  %v784_v44 = vld [vmem:[#allocation8 + $0x68] sm:$0xff]  ;;  %v774_v45 = vld [vmem:[#allocation8 + $0x18] sm:$0xff]  ;;  %v783_v46 = vld [vmem:[#allocation8 + $0x60] sm:$0xff] }
  0x2e   :  { %339 = vmatpush.bf16.msra.mxu3 %v632_v10  ;;  %v773_v47 = vld [vmem:[#allocation8 + $0x10] sm:$0xff]  ;;  %v782_v48 = vld [vmem:[#allocation8 + $0x58] sm:$0xff]  ;;  %v772_v49 = vld [vmem:[#allocation8 + $0x8] sm:$0xff] }
  0x2f   :  { %298 = vmatpush.bf16.msra.mxu0 %v556_v16  ;;  %v781_v50 = vld [vmem:[#allocation8 + $0x50] sm:$0xff]  ;;  %v771_v51 = vld [vmem:[#allocation8] sm:$0xff]  ;;  %v780_v52 = vld [vmem:[#allocation8 + $0x48] sm:$0xff] }
  0x30   :  { %312 = vmatpush.bf16.msra.mxu1 %v620_v18  ;;  %v779_v53 = vld [vmem:[#allocation8 + $0x40] sm:$0xff]  ;;  %v116_v54 = vld [vmem:[#allocation7] sm:$0x3]  ;;  %v796_v16 = vld [vmem:[%s995_s4] ss:$0 sm:$0xff] }
  0x31   :  { %326 = vmatpush.bf16.msra.mxu2 %v560_v19  ;;  %v118_v56 = vperm.slane %v116_v54, 0  ;;  %v119_v60 = vperm.slane %v116_v54, 1 }
  0x32   :  { %340 = vmatpush.bf16.msra.mxu3 %v624_v23 }
  0x33   :  { %299 = vmatpush.bf16.msra.mxu0 %v548_v28 }
  0x34   :  { %313 = vmatpush.bf16.msra.mxu1 %v612_v31 }
  0x35   :  { %327 = vmatpush.bf16.msra.mxu2 %v552_v32 }
  0x36   :  { %341 = vmatpush.bf16.msra.mxu3 %v616_v35  ;;  %300 = vmatmul.bf16.vlgmr.msra.gmra.mxu0 %v540_v37 }
  0x37   :  { %486 = vmatpush.bf16.msrb.mxu0 %v778_v36  ;;  %314 = vmatmul.bf16.vlgmr.msra.gmra.mxu1 %v544_v39 }
  0x38   :  { %500 = vmatpush.bf16.msrb.mxu1 %v786_v38  ;;  %328 = vmatmul.bf16.vlgmr.msra.gmra.mxu2 %v540_v37 }
  0x39   :  { %342 = vmatmul.bf16.vlgmr.msra.gmra.mxu3 %v544_v39 }
  0x3b   :  { %487 = vmatpush.bf16.msrb.mxu0 %v777_v40 }
  0x3c   :  { %501 = vmatpush.bf16.msrb.mxu1 %v785_v41 }
  0x3f   :  { %488 = vmatpush.bf16.msrb.mxu0 %v776_v42 }
  0x40   :  { %502 = vmatpush.bf16.msrb.mxu1 %v784_v44 }
  0x43   :  { %489 = vmatpush.bf16.msrb.mxu0 %v775_v43 }
  0x44   :  { %503 = vmatpush.bf16.msrb.mxu1 %v783_v46 }
  0x47   :  { %490 = vmatpush.bf16.msrb.mxu0 %v774_v45 }
  0x48   :  { %504 = vmatpush.bf16.msrb.mxu1 %v782_v48 }
  0x4b   :  { %491 = vmatpush.bf16.msrb.mxu0 %v773_v47 }
  0x4c   :  { %505 = vmatpush.bf16.msrb.mxu1 %v781_v50 }
  0x4f   :  { %492 = vmatpush.bf16.msrb.mxu0 %v772_v49 }
  0x50   :  { %506 = vmatpush.bf16.msrb.mxu1 %v780_v52 }
  0x53   :  { %493 = vmatpush.bf16.msrb.mxu0 %v771_v51 }
  0x54   :  { %507 = vmatpush.bf16.msrb.mxu1 %v779_v53 }
  0xb3   :  { %v301_v55 = vpop.f32.mrf.mxu0 }
  0xb4   :  { %v315_v57 = vpop.f32.mrf.mxu1  ;;  %v302_v58 = vadd.f32 %v301_v55, %v118_v56 }
  0xb6   :  { %v316_v63 = vadd.f32 %v315_v57, %v302_v58 }
  0xb8   :  { %v348_v4 = vmax.f32 %v316_v63, 0.0 }
  0xbb   :  { %v329_v59 = vpop.f32.mrf.mxu2  ;;  %v303_v62 = vpop.f32.mrf.mxu0 }
  0xbc   :  { %v343_v61 = vpop.f32.mrf.mxu3  ;;  %v304_v0 = vadd.f32 %v303_v62, %v118_v56  ;;  %v317_v1 = vpop.f32.mrf.mxu1  ;;  %v330_v3 = vadd.f32 %v329_v59, %v119_v60 }
  0xbe   :  { %v318_v2 = vadd.f32 %v317_v1, %v304_v0  ;;  %v344_v8 = vadd.f32 %v343_v61, %v330_v3 }
  0xc0   :  { %v350_v5 = vmax.f32 %v318_v2, 0.0  ;;  %v349_v12 = vmax.f32 %v344_v8, 0.0 }
  0xc2   :  { %v352_v6 = vpack.c.bf16 %v350_v5, %v348_v4 }
  0xc3   :  { %v331_v7 = vpop.f32.mrf.mxu2 }
  0xc4   :  { %v332_v9 = vadd.f32 %v331_v7, %v119_v60  ;;  %v345_v10 = vpop.f32.mrf.mxu3  ;;  %494 = vmatmul.bf16.vlgmr.msrb.gmra.mxu0 %v352_v6 }
  0xc6   :  { %v346_v11 = vadd.f32 %v345_v10, %v332_v9 }
  0xc8   :  { %v351_v13 = vmax.f32 %v346_v11, 0.0 }
  0xca   :  { %v353_v14 = vpack.c.bf16 %v351_v13, %v349_v12 }
  0xcc   :  { %508 = vmatmul.bf16.vlgmr.msrb.gmra.mxu1 %v353_v14 }
 0x141   :  { %v495_v15 = vpop.f32.mrf.mxu0 }
 0x142   :  { %v496_v17 = vadd.f32 %v796_v16, %v495_v15 }
 0x149   :  { %v509_v18 = vpop.f32.mrf.mxu1  ;;  %v497_v20 = vpop.f32.mrf.mxu0 }
 0x14a   :  { %v510_v19 = vadd.f32 %v509_v18, %v496_v17  ;;  %v498_v21 = vadd.f32 %v796_v16, %v497_v20 }
 0x14c   :  { %514 = vst [vmem:[#allocation10] sm:$0xff] %v510_v19 }
 0x151   :  { %v511_v22 = vpop.f32.mrf.mxu1 }
 0x152   :  { %v512_v23 = vadd.f32 %v511_v22, %v498_v21 }
 0x154   :  { %515 = vst [vmem:[#allocation10 + $0x8] sm:$0xff] %v512_v23 }
 0x155   :  { %528 = dma.vmem_to_hbm [thread:$0]  %s521_s16, 256, %s523_s19, [#allocation4], %s926_s26, %s926_s26, %s927_s27  }
 0x156   :  { %923 = dma.done.wait [#allocation4], 256  }
 0x157   :  { %924 = vsyncadd [#allocation4], 4294967040 }
 0x158   :  { %533 = vsyncpa [#allocation3], 1 }
 0x159   :  { %534 = vsyncpa [#allocation6], 1 }
 0x15a   :  { %535 = vsyncpa [#allocation9], 1 }
 0x15b   :  { %536 = vsyncpa [#allocation4], 1 }

</bundles_post_ra>
